<compile_context>
chip_gen: v7x
topology: tpu7x:2x2x1
jax: 0.10.0
libtpu: 0.0.40
codegen_flags: <defaults>
</compile_context>

<pallas_src>
import jax
import jax.numpy as jnp
from jax import lax
from jax.experimental import pallas as pl
from jax.experimental.pallas import tpu as pltpu


def _attention2_kernel(x_ref, w1_ref, b1_ref, w2t_ref, b2_ref, out_ref):
    # x: (tile_N, L)   w1: (L, D)   b1: (1, D) f32
    # w2t: (K, D)      b2: (K, 1) f32          out: (K, tile_N) f32
    # First matmul on the MXU (compute-dtype operands, f32 accumulation), tanh on EUP.
    h = jnp.tanh(
        jnp.dot(x_ref[...], w1_ref[...], preferred_element_type=jnp.float32)
        + b1_ref[...]
    )                                                                # (tile_N, D) f32
    # Second (tiny, K rows) matmul: contract D of w2t (K, D) against D of h
    # (tile_N, D) -> (K, tile_N).  Transposed-RHS MXU matmul: no XLU transpose of
    # the logits is ever materialized; operands in compute dtype, f32 accumulation.
    logits = lax.dot_general(
        w2t_ref[...], h.astype(w2t_ref.dtype),
        dimension_numbers=(((1,), (1,)), ((), ())),
        preferred_element_type=jnp.float32,
    ) + b2_ref[...]                                                  # (K, tile_N)
    out_ref[...] = logits.astype(out_ref.dtype)


def _vmem_capacity_bytes():
    try:
        return int(pltpu.get_tpu_info().vmem_capacity_bytes)
    except Exception:
        return 64 << 20   # conservative fallback == v7x per-TC VMEM


def _choose_tile(N, L, D, K, x_itemsize, vmem_limit_bytes, max_tile=4096):
    """Largest MXU-friendly tile that fits the VMEM budget, with >=2 grid steps
    when N is large enough (keeps both v7x TensorCores busy under 'parallel')."""
    if N < 512:
        return N                                   # single full-extent block (legal)
    weight_bytes = 2 * ((L * D + K * D) * x_itemsize + (D + K) * 4)   # dbl-buffered
    per_row = 2 * L * x_itemsize + 4 * D + 2 * 4 * K   # x dbuf + h f32 + out dbuf
    budget = max(1 << 20, vmem_limit_bytes - weight_bytes - (8 << 20))
    tile = min(max_tile, budget // per_row, -(-N // 2))   # cdiv(N, 2) => grid >= 2
    tile = max(256, (tile // 256) * 256)                  # multiple of 256 (MXU)
    return int(tile)


def attention2_forward(x, w1, b1, w2, b2, is_norm=True, *, tile_n=None,
                       compute_dtype=jnp.bfloat16):
    """x: (N, L).  w1: (L, D), b1: (D,), w2: (D, K), b2: (K,).  Returns (K, N) f32."""
    N, L = x.shape
    D = w1.shape[1]
    K = w2.shape[1]

    # One-time operand prep (hoisted out of the kernel): ideally the caller already
    # supplies x in compute_dtype so this cast is a no-op.
    x = x.astype(compute_dtype)
    w1c = w1.astype(compute_dtype)                 # (L, D)
    w2t = w2.T.astype(compute_dtype)               # (K, D); transpose-free 2nd matmul
    b1c = b1.reshape(1, D).astype(jnp.float32)     # biases stay f32 (added post-acc)
    b2c = b2.reshape(K, 1).astype(jnp.float32)

    x_bytes = jnp.dtype(compute_dtype).itemsize
    vmem_limit = min((_vmem_capacity_bytes() * 3) // 4, 100 << 20)
    tile = int(tile_n) if tile_n is not None else _choose_tile(
        N, L, D, K, x_bytes, vmem_limit)
    grid = (pl.cdiv(N, tile),)                     # ragged final block handled by Pallas

    cost = pl.CostEstimate(
        flops=2 * N * L * D + 2 * N * D * K,
        transcendentals=N * D,
        bytes_accessed=(N * L * x_bytes + (L * D + K * D) * x_bytes
                        + (D + K) * 4 + K * N * 4),
    )

    logits = pl.pallas_call(
        _attention2_kernel,
        out_shape=jax.ShapeDtypeStruct((K, N), jnp.float32),
        grid=grid,
        in_specs=[
            pl.BlockSpec((tile, L), lambda i: (i, 0)),   # x streams over N
            pl.BlockSpec((L, D), lambda i: (0, 0)),      # resident weights
            pl.BlockSpec((1, D), lambda i: (0, 0)),
            pl.BlockSpec((K, D), lambda i: (0, 0)),
            pl.BlockSpec((K, 1), lambda i: (0, 0)),
        ],
        out_specs=pl.BlockSpec((K, tile), lambda i: (0, i)),   # lane-dense (K, tile)
        compiler_params=pltpu.CompilerParams(
            dimension_semantics=("parallel",),   # no in-kernel reduction over N
            vmem_limit_bytes=int(vmem_limit),
        ),
        cost_estimate=cost,
    )(x, w1c, b1c, w2t, b2c)

    if is_norm:
        # Softmax over the N instances (dim=1 of (K, N)), done in the wrapper so the
        # kernel's N-grid axis stays parallel.  Any padded tail columns from a ragged
        # final block never reach here (OOB output stores are discarded by Pallas).
        logits = jax.nn.softmax(logits, axis=1)
    return logits


def init_params(key, L, D, K):
    """Deterministic xavier-normal weights, zero biases (matches initialize_weights)."""
    k1, k2 = jax.random.split(key)
    std1 = (2.0 / (L + D)) ** 0.5
    std2 = (2.0 / (D + K)) ** 0.5
    w1 = std1 * jax.random.normal(k1, (L, D), jnp.float32)   # stored (in, out)
    b1 = jnp.zeros((D,), jnp.float32)
    w2 = std2 * jax.random.normal(k2, (D, K), jnp.float32)
    b2 = jnp.zeros((K,), jnp.float32)
    return w1, b1, w2, b2


def attention2_reference(x, w1, b1, w2, b2, is_norm=True):
    h = jnp.tanh(x @ w1 + b1)
    a = (h @ w2 + b2).T
    if is_norm:
        a = jax.nn.softmax(a, axis=1)
    return a


if __name__ == "__main__":
    key = jax.random.PRNGKey(0)
    kx, kp, kx2, kp2 = jax.random.split(key, 4)

    # --- small shapes consistent with the module: N instances, L feats, D hidden, K heads.
    N, L, D, K = 8, 32, 16, 1
    x = jax.random.normal(kx, (N, L), jnp.float32)
    w1, b1, w2, b2 = init_params(kp, L, D, K)
    ref = attention2_reference(x, w1, b1, w2, b2, is_norm=True)

    # Exact path (f32 matmuls) -- tight tolerance.
    out_f32 = attention2_forward(x, w1, b1, w2, b2, is_norm=True,
                                 compute_dtype=jnp.float32)
    out_f32 = jax.block_until_ready(out_f32)
    assert out_f32.shape == (K, N)
    assert jnp.allclose(out_f32, ref, atol=1e-5, rtol=1e-5), (out_f32, ref)

    # Fast path: x cast to bf16 at the producer so the kernel streams 2 B/elem.
    out_bf16 = attention2_forward(x.astype(jnp.bfloat16), w1, b1, w2, b2, is_norm=True)
    out_bf16 = jax.block_until_ready(out_bf16)
    assert jnp.allclose(out_bf16, ref, atol=2e-2, rtol=2e-2), (out_bf16, ref)

    # Tiled ragged path: N not a multiple of tile, no jnp.pad copy of x, and the
    # parallel N grid + wrapper softmax are exercised.
    N2, L2, D2, K2 = 300, 64, 32, 1
    x2 = jax.random.normal(kx2, (N2, L2), jnp.float32)
    p2 = init_params(kp2, L2, D2, K2)
    out2 = attention2_forward(x2, *p2, is_norm=True, tile_n=128)
    out2 = jax.block_until_ready(out2)
    ref2 = attention2_reference(x2, *p2, is_norm=True)
    assert out2.shape == (K2, N2)
    assert jnp.allclose(out2, ref2, atol=2e-2, rtol=2e-2), (out2, ref2)

    print("KERNEL_OK")
</pallas_src>

<mosaic_0001>
module attributes {stable_mosaic.version = 11 : i64} {
  func.func @_attention2_kernel(%arg0: i32, %arg1: memref<8x32xf32, #tpu.memory_space<vmem>>, %arg2: memref<32x16xf32, #tpu.memory_space<vmem>>, %arg3: memref<1x16xf32, #tpu.memory_space<vmem>>, %arg4: memref<1x16xf32, #tpu.memory_space<vmem>>, %arg5: memref<1x1xf32, #tpu.memory_space<vmem>>, %arg6: memref<1x8xf32, #tpu.memory_space<vmem>>) attributes {dimension_semantics = [#tpu.dimension_semantics<parallel>], iteration_bounds = array<i64: 1>, scalar_prefetch = 0 : i64, scratch_operands = 0 : i64, tpu.core_type = #tpu.core_type<tc>, window_params = [{transform_indices = @transform_0, window_bounds = array<i64: 8, 32>}, {pipeline_mode = #tpu.pipeline_mode<synchronous>, transform_indices = @transform_1, window_bounds = array<i64: 32, 16>}, {pipeline_mode = #tpu.pipeline_mode<synchronous>, transform_indices = @transform_2, window_bounds = array<i64: 1, 16>}, {pipeline_mode = #tpu.pipeline_mode<synchronous>, transform_indices = @transform_3, window_bounds = array<i64: 1, 16>}, {pipeline_mode = #tpu.pipeline_mode<synchronous>, transform_indices = @transform_4, window_bounds = array<i64: 1, 1>}, {transform_indices = @transform_5, window_bounds = array<i64: 1, 8>}]} {
    %c0 = arith.constant 0 : index
    %c0_0 = arith.constant 0 : index
    %0 = vector.load %arg1[%c0, %c0_0] : memref<8x32xf32, #tpu.memory_space<vmem>>, vector<8x32xf32>
    %c0_1 = arith.constant 0 : index
    %c0_2 = arith.constant 0 : index
    %1 = vector.load %arg2[%c0_1, %c0_2] : memref<32x16xf32, #tpu.memory_space<vmem>>, vector<32x16xf32>
    %cst = arith.constant dense<0.000000e+00> : vector<8x16xf32>
    %2 = tpu.matmul %0, %1, %cst {dimension_numbers = #tpu.dot_dimension_numbers<[1], [0], [0], [1], [0, 0, 1, 1], [], []>} : vector<8x32xf32>, vector<32x16xf32>, vector<8x16xf32> -> vector<8x16xf32>
    %c0_3 = arith.constant 0 : index
    %c0_4 = arith.constant 0 : index
    %3 = vector.load %arg3[%c0_3, %c0_4] : memref<1x16xf32, #tpu.memory_space<vmem>>, vector<1x16xf32>
    %4 = vector.broadcast %3 : vector<1x16xf32> to vector<8x16xf32>
    %5 = arith.addf %2, %4 : vector<8x16xf32>
    %6 = math.tanh %5 : vector<8x16xf32>
    %c0_5 = arith.constant 0 : index
    %c0_6 = arith.constant 0 : index
    %7 = vector.load %arg4[%c0_5, %c0_6] : memref<1x16xf32, #tpu.memory_space<vmem>>, vector<1x16xf32>
    %cst_7 = arith.constant dense<0.000000e+00> : vector<1x8xf32>
    %8 = tpu.matmul %7, %6, %cst_7 {dimension_numbers = #tpu.dot_dimension_numbers<[1], [1], [0], [0], [0, 0, 1, 0], [], []>} : vector<1x16xf32>, vector<8x16xf32>, vector<1x8xf32> -> vector<1x8xf32>
    %c0_8 = arith.constant 0 : index
    %c0_9 = arith.constant 0 : index
    %9 = vector.load %arg5[%c0_8, %c0_9] : memref<1x1xf32, #tpu.memory_space<vmem>>, vector<1x1xf32>
    %10 = vector.broadcast %9 : vector<1x1xf32> to vector<1x8xf32>
    %11 = arith.addf %8, %10 : vector<1x8xf32>
    %c0_10 = arith.constant 0 : index
    %c0_11 = arith.constant 0 : index
    %12 = vector.load %arg6[%c0_10, %c0_11] : memref<1x8xf32, #tpu.memory_space<vmem>>, vector<1x8xf32>
    tpu.vector_store %arg6[%c0_10, %c0_11], %11 {strides = array<i32>} : memref<1x8xf32, #tpu.memory_space<vmem>>, vector<1x8xf32>,
    return
  }
  func.func @transform_0(%arg0: i32) -> (i32, i32) {
    %c0_i32 = arith.constant 0 : i32
    %c0_i32_0 = arith.constant 0 : i32
    return %arg0, %c0_i32 : i32, i32
  }
  func.func @transform_1(%arg0: i32) -> (i32, i32) {
    %c0_i32 = arith.constant 0 : i32
    %c0_i32_0 = arith.constant 0 : i32
    %c0_i32_1 = arith.constant 0 : i32
    return %c0_i32, %c0_i32_0 : i32, i32
  }
  func.func @transform_2(%arg0: i32) -> (i32, i32) {
    %c0_i32 = arith.constant 0 : i32
    %c0_i32_0 = arith.constant 0 : i32
    %c0_i32_1 = arith.constant 0 : i32
    return %c0_i32, %c0_i32_0 : i32, i32
  }
  func.func @transform_3(%arg0: i32) -> (i32, i32) {
    %c0_i32 = arith.constant 0 : i32
    %c0_i32_0 = arith.constant 0 : i32
    %c0_i32_1 = arith.constant 0 : i32
    return %c0_i32, %c0_i32_0 : i32, i32
  }
  func.func @transform_4(%arg0: i32) -> (i32, i32) {
    %c0_i32 = arith.constant 0 : i32
    %c0_i32_0 = arith.constant 0 : i32
    %c0_i32_1 = arith.constant 0 : i32
    return %c0_i32, %c0_i32_0 : i32, i32
  }
  func.func @transform_5(%arg0: i32) -> (i32, i32) {
    %c0_i32 = arith.constant 0 : i32
    %c0_i32_0 = arith.constant 0 : i32
    return %c0_i32, %arg0 : i32, i32
  }
}

</mosaic_0001>

<bundles_post_ra>
// kernel: tpu_custom_call.1
= control target key start
LH: loop header
LB: loop body
LE: loop exit
PB: predicated region body
PF: predicated region fallthrough
CT: control target
= control target key end

     0   :  { %s350_s0 = inlined_call_operand.vmem [shape: f32[8,32], index: 0, kind: input, shape index: {}]   ;;  %s351_s1 = inlined_call_operand.vmem [shape: f32[32,16], index: 1, kind: input, shape index: {}]   ;;  %s352_s2 = inlined_call_operand.vmem [shape: f32[1,16], index: 2, kind: input, shape index: {}]   ;;  %s353_s3 = inlined_call_operand.vmem [shape: f32[1,16], index: 3, kind: input, shape index: {}]   ;;  %s354_s4 = inlined_call_operand.<no memory space> [shape: f32[1,1], index: 4, kind: input, shape index: {}]   ;;  %s355_s5 = inlined_call_operand.hbm [shape: f32[1,8], index: 5, kind: output, shape index: {}]  }
   0x1   :  { %v10_v0 = vstv %s354_s4 }
   0x2   :  { %11 = vst [vmem:[#allocation2] sm:$0x1] %v10_v0 }
   0x3   :  { %v24_v1 = vld [vmem:[%s351_s1] sm:$0xff]  ;;  %v25_v2 = vld [vmem:[%s351_s1 + $0x8] sm:$0xff]  ;;  %v26_v3 = vld [vmem:[%s351_s1 + $0x10] sm:$0xff]  ;;  %v279_v4 = vmov 0.0|0.0   ;;  %vm280_vm0 = vmmov 0   ;;  %v281_v7 = vmov 0.0  }
   0x4   :  { %241 = vmatprep.subr.bf16.mxu0 %v279_v4  ;;  %v242_v5 = vpack.c.bf16 %v25_v2, %v24_v1  ;;  %v27_v6 = vld [vmem:[%s351_s1 + $0x18] sm:$0xff]  ;;  %233 = vmatprep.mubr.msk.f32.mxu0 %vm280_vm0, %v281_v7 }
   0x5   :  { %236 = vmatprep.subr.mxu1 %v281_v7  ;;  %238 = vmatprep.mubr.msk.f32.mxu1 %vm280_vm0, %v281_v7 }
   0x6   :  { %12 = vsyncpa [#allocation4], 0  ;;  %243 = vmatpush3.bf16.msra.mxu0 %v242_v5  ;;  %v245_v8 = vpack.c.bf16 %v27_v6, %v26_v3  ;;  %v23_v9 = vld [vmem:[%s350_s0] sm:$0xff]  ;;  %vm35_vm1 = vcmask 261120   ;;  %v282_v11 = vmov 0   ;;  %vm121_vm2 = vcmask 130048  }
   0x7   :  { %244 = vmatprep.subr.bf16.mxu0 %v279_v4  ;;  %252 = vset.pattern.permute.xlu0 %v282_v11  ;;  %v214_v12 = vld [vmem:[%s352_s2] ss:$0 sm:$0xff]  ;;  %v117_v18 = vlaneseq  ;;  %s283_s0 = smov [#allocation3]   ;;  %vm198_vm3 = vcmask 57344  }
   0x8   :  { %v110_v17 = vld [vmem:[%s353_s3] sm:$0x1]  ;;  %s206_s7 = sshll.u32 %s283_s0, 4  ;;  %s207_s7 = int_to_ptr.vmem [resolvable:$true] %s206_s7 }
   0x9   :  { %v111_v10 = vld [vmem:[#allocation2] sm:$0x1]  ;;  %v118_v19 = vshrl.u32 %v117_v18, 7  ;;  %s255_s2 = scalar_lea.vmem %s207_s7, 16  ;;  %s259_s8 = scalar_lea.vmem %s207_s7, 32 }
   0xa   :  { %246 = vmatpush3.bf16.msra.mxu0 %v245_v8  ;;  %114 = vperm.xlu0 %252, %v111_v10   ;;  %p256_p0 = scmp.ne.s32.totalorder %s207_s7, %s255_s2  ;;  %p260_p1 = scmp.lt.s32.totalorder %s207_s7, %s207_s7 }
   0xb   :  { %v119_v20 = vsub.s32 0, %v118_v19  ;;  %p261_p2 = scmp.lt.s32.totalorder %s259_s8, %s255_s2 }
   0xd   :  { %234 = vmatmul.mubr.msk.f32.vlgmr.msra.gmra.mrb[0].mxu0 %vm35_vm1, %v23_v9  ;;  %p262_p3 = por %p261_p2, %p260_p1 }
   0xf   :  { %p263_p4 = pnand %p262_p3, %p256_p0 }
  0x89   :  { %v115_v21 = vpop.permute.xlu0 %114 }
  0x8a   :  { %v120_v22 = vrot.slane %v115_v21, %v119_v20 }
  0xe0   :  { %v105_v13 = vpop.f32.mrb[0].mxu0 }
  0xe1   :  { %v106_v14 = vadd.f32 %v214_v12, %v105_v13  ;;  %v235_v15 = vpop.f32.mrb[1].mxu0 }
  0xe3   :  { %253 = vtanh.f32 %v106_v14 }
  0xed   :  { %v254_v16 = vpop.eup %253 }
  0xee   :  { %237 = vmatpush3.xpose.msk.msra.mxu1 %vm121_vm2, %v254_v16 }
  0xf1   :  { %239 = vmatmul.mubr.msk.f32.vlgmr.msra.gmra.mrb[0].mxu1 %vm121_vm2, %v110_v17 }
 0x1c4   :  { %v194_v23 = vpop.f32.mrb[0].mxu1 }
 0x1c5   :  { %v195_v24 = vadd.f32 %v194_v23, %v120_v22  ;;  %v240_v25 = vpop.f32.mrb[1].mxu1 }
 0x1c7   :  { %199 = vst.msk [vmem:[#allocation3] sm:$0x1] %vm198_vm3, %v195_v24 }
 0x1c8   :  { %266 = shalt.err (!%p263_p4)
}
 0x1c9   :  { %s267_s10 = scalar_lea.hbm %s355_s5, 16 }
 0x1ca   :  { %p268_p5 = scmp.ne.s32.totalorder %s355_s5, %s267_s10  ;;  %p271_p6 = scmp.lt.u32.totalorder %s267_s10, %s355_s5 }
 0x1cc   :  { %p273_p7 = pnand %p271_p6, %p268_p5 }
 0x1ce   :  { %276 = shalt.err (!%p273_p7)
}
 0x1cf   :  { %209 = dma.vmem_to_hbm [thread:$0]  %s207_s7, 16, %s355_s5, [#allocation4]  }
 0x1d0   :  { %277 = dma.done.wait [#allocation4], 16  }
 0x1d1   :  { %278 = vsyncadd [#allocation4], 4294967280 }
 0x1d2   :  { %213 = vsyncpa [#allocation4], 1 }

</bundles_post_ra>
